<compile_context>
chip_gen: v5e
topology: v5e:2x2
jax: 0.10.0
libtpu: 0.0.40
codegen_flags: <defaults>
</compile_context>

<pallas_src>
import functools

import numpy as np
import jax
import jax.numpy as jnp
from jax.experimental import pallas as pl
from jax.experimental.pallas import tpu as pltpu


def _round_up(x, m):
    return (x + m - 1) // m * m


def _pick_tile(dim, candidates):
    for t in candidates:
        if dim % t == 0:
            return t
    return dim


@functools.lru_cache(maxsize=None)
def _vmem_limit_bytes():
    """Generation-aware VMEM limit: ~48 MiB on v7x-class (64 MiB VMEM),
    ~96 MiB on v5e/v6e (128 MiB VMEM)."""
    try:
        cap = int(pltpu.get_tpu_info().vmem_capacity_bytes)
    except Exception:
        cap = 64 * 1024 * 1024            # conservative fallback (v7x-sized)
    if cap <= 64 * 1024 * 1024:
        return 48 * 1024 * 1024
    return 96 * 1024 * 1024


def _choose_tiles(B_pad, F_pad, O_pad, budget_bytes):
    """Pick (tm, tn, tk) under a double-buffered VMEM budget."""
    # M tile: whole (padded) batch if small, else a divisor <= 256.
    tm = B_pad if B_pad <= 256 else _pick_tile(B_pad, (256, 128, 64, 32, 16))

    # O tile: largest lane-dense divisor; prefer an even O-tile count for the
    # v7x megacore when halving the tile still leaves >= 128 lanes.
    tn = _pick_tile(O_pad, (512, 256, 128))
    if ((O_pad // tn) % 2 == 1 and tn >= 256 and O_pad % (tn // 2) == 0
            and (O_pad // (tn // 2)) % 2 == 0):
        tn //= 2

    # K tile: as large as possible so the per-step weight tile (>= ~1 MiB when
    # shapes allow) amortizes the ~0.35 us grid-step overhead.
    tk = 128
    for cand in (2048, 1024, 512, 256, 128):
        if F_pad % cand != 0:
            continue
        x_bytes = 2 * tm * cand * 2        # double-buffered bf16 x tile
        v_bytes = 2 * cand * tn * 2        # double-buffered bf16 weight tile
        o_bytes = 2 * tm * tn * 4          # double-buffered f32 output tile
        if x_bytes + v_bytes + o_bytes <= budget_bytes:
            tk = cand
            break
    return tm, tn, tk


def _normed_dense_kernel(x_ref, vt_ref, scale_ref, b_ref, o_ref):
    """One (tm, tn) output block of  out = (x @ v_t) * scale + b.

    Grid is (M tiles, O tiles, K tiles), K last.  scale = g * rsqrt(sum v^2)
    is precomputed outside the kernel; the grid body is pure MXU + DMA and the
    output block (constant index across K) is used as the accumulator.
    """
    k = pl.program_id(2)

    @pl.when(k == 0)
    def _():
        o_ref[...] = jnp.zeros_like(o_ref)

    # MXU: bf16 x bf16 -> f32, accumulated directly into the resident output.
    o_ref[...] += jnp.dot(x_ref[...], vt_ref[...],
                          preferred_element_type=jnp.float32)

    @pl.when(k == pl.num_programs(2) - 1)
    def _():
        o_ref[...] = o_ref[...] * scale_ref[...] + b_ref[...]


@functools.partial(jax.jit, static_argnames=("out_features",))
def normed_dense_forward(x_flat, v_p, scale_p, b_p, *, out_features):
    """Weight-normalized dense layer.

    x_flat:  (B, F)          activations (any float dtype)
    v_p:     (F_pad, O_pad)  bf16 weight_v, pre-transposed & pre-padded
    scale_p: (1, O_pad)      f32  precomputed g * rsqrt(sum(v^2, axis=F))
    b_p:     (1, O_pad)      f32  bias (padded lanes are 0)
    Returns (B, out_features) float32.
    """
    B, F = x_flat.shape
    F_pad, O_pad = v_p.shape

    # bf16 LHS packs 16 rows per sublane group -> pad B to a multiple of 16.
    B_pad = _round_up(max(B, 16), 16)
    x_p = jnp.zeros((B_pad, F_pad), jnp.bfloat16)
    x_p = x_p.at[:B, :F].set(x_flat.astype(jnp.bfloat16))

    vmem_limit = _vmem_limit_bytes()
    tm, tn, tk = _choose_tiles(B_pad, F_pad, O_pad, int(vmem_limit * 0.7))

    grid = (B_pad // tm, O_pad // tn, F_pad // tk)

    out = pl.pallas_call(
        _normed_dense_kernel,
        out_shape=jax.ShapeDtypeStruct((B_pad, O_pad), jnp.float32),
        grid_spec=pltpu.PrefetchScalarGridSpec(
            num_scalar_prefetch=0,
            grid=grid,
            in_specs=[
                pl.BlockSpec((tm, tk), lambda i, j, k: (i, k)),   # x
                pl.BlockSpec((tk, tn), lambda i, j, k: (k, j)),   # v_t (padded)
                pl.BlockSpec((1, tn), lambda i, j, k: (0, j)),    # scale
                pl.BlockSpec((1, tn), lambda i, j, k: (0, j)),    # bias
            ],
            out_specs=pl.BlockSpec((tm, tn), lambda i, j, k: (i, j)),
        ),
        compiler_params=pltpu.CompilerParams(
            dimension_semantics=("parallel", "parallel", "arbitrary"),
            vmem_limit_bytes=vmem_limit,
        ),
    )(x_p, v_p, scale_p, b_p)

    return out[:B, :out_features]


class NormedDense:
    """JAX/Pallas port of the PyTorch NormedDense module (forward pass)."""

    def __init__(self, tensor_shape, out_features, weightnorm=True, key=None):
        self._input_shp = tensor_shape
        self._output_shp = (-1, out_features)
        self.input_features = int(np.prod(tensor_shape[1:]))
        self.out_features = out_features
        self.weightnorm = weightnorm

        F, O = self.input_features, out_features
        self.F_pad = _round_up(F, 128)
        self.O_pad = _round_up(O, 128)

        key = jax.random.PRNGKey(0) if key is None else key
        if self.weightnorm:
            # Matches init_parameters(): weight_v ~ N(0, 0.05), g = 1, bias = 0.
            v = 0.05 * jax.random.normal(key, (O, F), jnp.float32)
            v_t = v.T.astype(jnp.bfloat16)           # stored (F, O) bf16
            self.g = jnp.ones((O,), jnp.float32)
            self.b = jnp.zeros((O,), jnp.float32)
            self.initialized = False
        else:
            # Plain nn.Linear: g is set to the per-column norm of v so the
            # weight-norm scaling is the identity, reusing the same kernel.
            bound = 1.0 / np.sqrt(F)
            k1, k2 = jax.random.split(key)
            v = jax.random.uniform(k1, (O, F), jnp.float32, -bound, bound)
            v_t = v.T.astype(jnp.bfloat16)
            v32 = v_t.astype(jnp.float32)
            self.g = jnp.sqrt(jnp.sum(v32 * v32, axis=0))
            self.b = jax.random.uniform(k2, (O,), jnp.float32, -bound, bound)
            self.initialized = True

        self.v_t = v_t
        # --- One-time, hoisted out of the per-call path -----------------
        # Padded weight (zeros in padded rows/cols: no dot contribution).
        self.v_p = (jnp.zeros((self.F_pad, self.O_pad), jnp.bfloat16)
                    .at[:F, :O].set(v_t))
        # Per-output-column sum of squares of v (weight is frozen here).
        v32 = v_t.astype(jnp.float32)
        self.ssq = jnp.sum(v32 * v32, axis=0)          # (O,) f32
        self._refresh_scale_bias()

    def _refresh_scale_bias(self):
        """Recompute the padded (1, O_pad) scale/bias rows from g, b, ssq."""
        O = self.out_features
        scale = self.g * jax.lax.rsqrt(self.ssq)       # g / ||v_col||
        self.scale_p = (jnp.zeros((1, self.O_pad), jnp.float32)
                        .at[0, :O].set(scale))
        self.b_p = (jnp.zeros((1, self.O_pad), jnp.float32)
                    .at[0, :O].set(self.b.astype(jnp.float32)))

    @property
    def input_shape(self):
        return self._input_shp

    @property
    def output_shape(self):
        return self._output_shp

    def _init_parameters(self, x_flat, eps=1e-8):
        # Data-dependent weight-norm init (first forward), mirroring PyTorch's
        # init_parameters().  The matmul runs in the Pallas kernel; the tiny
        # (B, O) batch statistics / parameter update are host-side glue.
        pre = normed_dense_forward(x_flat, self.v_p, self.scale_p, self.b_p,
                                   out_features=self.out_features)  # g=1, b=0
        init_scale = 0.01
        m_init = jnp.mean(pre, axis=0)
        # NOTE: torch.var is unbiased (ddof=1); like PyTorch this is NaN for
        # batch size 1.
        v_init = jnp.var(pre, axis=0, ddof=1)
        scale_init = init_scale / jnp.sqrt(v_init + eps)
        self.g = self.g * scale_init
        self.b = self.b - m_init * scale_init
        self._refresh_scale_bias()
        self.initialized = True

    def __call__(self, x):
        B = x.shape[0]
        x_flat = x.reshape(B, -1)
        if self.weightnorm and not self.initialized:
            self._init_parameters(x_flat)
        return normed_dense_forward(x_flat, self.v_p, self.scale_p, self.b_p,
                                    out_features=self.out_features)


def _reference_forward(x_flat, v_t, g, b):
    """Pure-JAX reference (inputs passed through bf16 like the MXU path)."""
    x32 = x_flat.astype(jnp.bfloat16).astype(jnp.float32)
    v32 = v_t.astype(jnp.bfloat16).astype(jnp.float32)
    scale = g.astype(jnp.float32) * jax.lax.rsqrt(jnp.sum(v32 * v32, axis=0))
    return (x32 @ v32) * scale[None, :] + b.astype(jnp.float32)[None, :]


if __name__ == "__main__":
    # --- small demo shape (B, C, D) per the module docstring -----------------
    B, C, D = 2, 4, 16
    out_features = 32
    tensor_shape = (B, C, D)

    key = jax.random.PRNGKey(0)
    k_x, k_w, k_x2, k_w2 = jax.random.split(key, 4)
    x = jax.random.normal(k_x, tensor_shape, jnp.float32)

    layer = NormedDense(tensor_shape, out_features, weightnorm=True, key=k_w)
    y = jax.block_until_ready(layer(x))        # first call: data-dependent init
    assert y.shape == (B, out_features), y.shape

    y_ref = _reference_forward(x.reshape(B, -1), layer.v_t, layer.g, layer.b)
    np.testing.assert_allclose(np.asarray(y), np.asarray(y_ref),
                               rtol=1e-3, atol=1e-4)

    # Second call (already initialized) is the plain weight-norm linear.
    y2 = jax.block_until_ready(layer(x))
    np.testing.assert_allclose(np.asarray(y2), np.asarray(y_ref),
                               rtol=1e-3, atol=1e-4)

    # --- a larger shape that exercises multiple O and K tiles ---------------
    B2, C2, D2 = 4, 6, 128            # F = 768  -> 3 K tiles of 256
    O2 = 384                          # O = 384  -> 3 O tiles of 128
    x2 = jax.random.normal(k_x2, (B2, C2, D2), jnp.float32)
    layer2 = NormedDense((B2, C2, D2), O2, weightnorm=False, key=k_w2)
    z = jax.block_until_ready(layer2(x2))
    z_ref = _reference_forward(x2.reshape(B2, -1), layer2.v_t,
                               layer2.g, layer2.b)
    np.testing.assert_allclose(np.asarray(z), np.asarray(z_ref),
                               rtol=1e-3, atol=1e-4)

    print("KERNEL_OK")
</pallas_src>

<mosaic_0001>
module attributes {stable_mosaic.version = 11 : i64} {
  func.func @_normed_dense_kernel(%arg0: i32, %arg1: i32, %arg2: i32, %arg3: memref<16x128xbf16, #tpu.memory_space<vmem>>, %arg4: memref<128x128xbf16, #tpu.memory_space<vmem>>, %arg5: memref<1x128xf32, #tpu.memory_space<vmem>>, %arg6: memref<1x128xf32, #tpu.memory_space<vmem>>, %arg7: memref<16x128xf32, #tpu.memory_space<vmem>>) attributes {dimension_semantics = [#tpu.dimension_semantics<parallel>, #tpu.dimension_semantics<parallel>, #tpu.dimension_semantics<arbitrary>], iteration_bounds = array<i64: 1, 1, 1>, scalar_prefetch = 0 : i64, scratch_operands = 0 : i64, tpu.core_type = #tpu.core_type<tc>, window_params = [{transform_indices = @transform_0, window_bounds = array<i64: 16, 128>}, {transform_indices = @transform_1, window_bounds = array<i64: 128, 128>}, {transform_indices = @transform_2, window_bounds = array<i64: 1, 128>}, {transform_indices = @transform_3, window_bounds = array<i64: 1, 128>}, {transform_indices = @transform_4, window_bounds = array<i64: 16, 128>}]} {
    %c0_i32 = arith.constant 0 : i32
    %0 = arith.cmpi eq, %arg2, %c0_i32 : i32
    %1 = arith.extui %0 : i1 to i32
    %c0_i32_0 = arith.constant 0 : i32
    %2 = arith.cmpi ne, %1, %c0_i32_0 : i32
    scf.if %2 {
      %cst_10 = arith.constant 0.000000e+00 : f32
      %12 = vector.broadcast %cst_10 : f32 to vector<16x128xf32>
      %c0_11 = arith.constant 0 : index
      %c0_12 = arith.constant 0 : index
      %13 = vector.load %arg7[%c0_11, %c0_12] : memref<16x128xf32, #tpu.memory_space<vmem>>, vector<16x128xf32>
      tpu.vector_store %arg7[%c0_11, %c0_12], %12 {strides = array<i32>} : memref<16x128xf32, #tpu.memory_space<vmem>>, vector<16x128xf32>,
    } else {
    }
    %c0 = arith.constant 0 : index
    %c0_1 = arith.constant 0 : index
    %3 = vector.load %arg7[%c0, %c0_1] : memref<16x128xf32, #tpu.memory_space<vmem>>, vector<16x128xf32>
    %c0_2 = arith.constant 0 : index
    %c0_3 = arith.constant 0 : index
    %4 = vector.load %arg3[%c0_2, %c0_3] : memref<16x128xbf16, #tpu.memory_space<vmem>>, vector<16x128xbf16>
    %c0_4 = arith.constant 0 : index
    %c0_5 = arith.constant 0 : index
    %5 = vector.load %arg4[%c0_4, %c0_5] : memref<128x128xbf16, #tpu.memory_space<vmem>>, vector<128x128xbf16>
    %cst = arith.constant dense<0.000000e+00> : vector<16x128xf32>
    %6 = tpu.matmul %4, %5, %cst {dimension_numbers = #tpu.dot_dimension_numbers<[1], [0], [0], [1], [0, 0, 1, 1], [], []>} : vector<16x128xbf16>, vector<128x128xbf16>, vector<16x128xf32> -> vector<16x128xf32>
    %7 = arith.addf %3, %6 : vector<16x128xf32>
    %c0_6 = arith.constant 0 : index
    %c0_7 = arith.constant 0 : index
    %8 = vector.load %arg7[%c0_6, %c0_7] : memref<16x128xf32, #tpu.memory_space<vmem>>, vector<16x128xf32>
    tpu.vector_store %arg7[%c0_6, %c0_7], %7 {strides = array<i32>} : memref<16x128xf32, #tpu.memory_space<vmem>>, vector<16x128xf32>,
    %c0_i32_8 = arith.constant 0 : i32
    %9 = arith.cmpi eq, %arg2, %c0_i32_8 : i32
    %10 = arith.extui %9 : i1 to i32
    %c0_i32_9 = arith.constant 0 : i32
    %11 = arith.cmpi ne, %10, %c0_i32_9 : i32
    scf.if %11 {
      %c0_10 = arith.constant 0 : index
      %c0_11 = arith.constant 0 : index
      %12 = vector.load %arg7[%c0_10, %c0_11] : memref<16x128xf32, #tpu.memory_space<vmem>>, vector<16x128xf32>
      %c0_12 = arith.constant 0 : index
      %c0_13 = arith.constant 0 : index
      %13 = vector.load %arg5[%c0_12, %c0_13] : memref<1x128xf32, #tpu.memory_space<vmem>>, vector<1x128xf32>
      %14 = vector.broadcast %13 : vector<1x128xf32> to vector<16x128xf32>
      %15 = arith.mulf %12, %14 : vector<16x128xf32>
      %c0_14 = arith.constant 0 : index
      %c0_15 = arith.constant 0 : index
      %16 = vector.load %arg6[%c0_14, %c0_15] : memref<1x128xf32, #tpu.memory_space<vmem>>, vector<1x128xf32>
      %17 = vector.broadcast %16 : vector<1x128xf32> to vector<16x128xf32>
      %18 = arith.addf %15, %17 : vector<16x128xf32>
      %c0_16 = arith.constant 0 : index
      %c0_17 = arith.constant 0 : index
      %19 = vector.load %arg7[%c0_16, %c0_17] : memref<16x128xf32, #tpu.memory_space<vmem>>, vector<16x128xf32>
      tpu.vector_store %arg7[%c0_16, %c0_17], %18 {strides = array<i32>} : memref<16x128xf32, #tpu.memory_space<vmem>>, vector<16x128xf32>,
    } else {
    }
    return
  }
  func.func @transform_0(%arg0: i32, %arg1: i32, %arg2: i32) -> (i32, i32) {
    %c0_i32 = arith.constant 0 : i32
    return %arg0, %arg2 : i32, i32
  }
  func.func @transform_1(%arg0: i32, %arg1: i32, %arg2: i32) -> (i32, i32) {
    %c0_i32 = arith.constant 0 : i32
    return %arg2, %arg1 : i32, i32
  }
  func.func @transform_2(%arg0: i32, %arg1: i32, %arg2: i32) -> (i32, i32) {
    %c0_i32 = arith.constant 0 : i32
    %c0_i32_0 = arith.constant 0 : i32
    return %c0_i32, %arg1 : i32, i32
  }
  func.func @transform_3(%arg0: i32, %arg1: i32, %arg2: i32) -> (i32, i32) {
    %c0_i32 = arith.constant 0 : i32
    %c0_i32_0 = arith.constant 0 : i32
    return %c0_i32, %arg1 : i32, i32
  }
  func.func @transform_4(%arg0: i32, %arg1: i32, %arg2: i32) -> (i32, i32) {
    %c0_i32 = arith.constant 0 : i32
    return %arg0, %arg1 : i32, i32
  }
}

</mosaic_0001>

<bundles_post_ra>
// kernel: normed_dense_forward.1
= control target key start
LH: loop header
LB: loop body
LE: loop exit
PB: predicated region body
PF: predicated region fallthrough
CT: control target
= control target key end

     0   :  { %9 = vsyncpa [#allocation3], 0  ;;  %s232_s18 = smov [#allocation2]   ;;  %s233_s20 = smov 64   ;;  %s278_s0 = inlined_call_operand.vmem [shape: bf16[16,128], index: 0, kind: input, shape index: {}]   ;;  %s279_s1 = inlined_call_operand.hbm [shape: bf16[128,128], index: 1, kind: input, shape index: {}]   ;;  %s280_s2 = inlined_call_operand.vmem [shape: f32[1,128], index: 2, kind: input, shape index: {}]   ;;  %s281_s3 = inlined_call_operand.vmem [shape: f32[1,128], index: 3, kind: input, shape index: {}]   ;;  %s282_s4 = inlined_call_operand.vmem [shape: f32[16,128], index: 4, kind: output, shape index: {}]  }
   0x1   :  { %s16_s17 = sshll.u32 %s279_s1, 4  ;;  %s18_s19 = sshll.u32 %s232_s18, 4  ;;  %s17_s17 = int_to_ptr.hbm [resolvable:$true] %s16_s17  ;;  %s19_s19 = int_to_ptr.vmem [resolvable:$true] %s18_s19 }
   0x2   :  { %s234_s21 = smov 4  }
   0x3   :  { %24 = dma.hbm_to_vmem [thread:$0]  %s17_s17, 1024, %s19_s19, [#allocation3], %s233_s20, %s233_s20, %s234_s21  }
   0x4   :  { %230 = dma.done.wait [#allocation3], 1024  }
   0x5   :  { %231 = vsyncadd [#allocation3], 4294966272  ;;  %v199_v0 = vld [vmem:[#allocation2 + $0x38] sm:$0xff]  ;;  %v198_v1 = vld [vmem:[#allocation2 + $0x30] sm:$0xff] }
   0x6   :  { %113 = vmatpush.bf16.msra.mxu0 %v199_v0  ;;  %v197_v2 = vld [vmem:[#allocation2 + $0x28] sm:$0xff]  ;;  %v196_v3 = vld [vmem:[#allocation2 + $0x20] sm:$0xff]  ;;  %v195_v4 = vld [vmem:[#allocation2 + $0x18] sm:$0xff] }
   0x7   :  { %v194_v5 = vld [vmem:[#allocation2 + $0x10] sm:$0xff]  ;;  %v193_v6 = vld [vmem:[#allocation2 + $0x8] sm:$0xff]  ;;  %v192_v7 = vld [vmem:[#allocation2] sm:$0xff] }
   0x8   :  { %v191_v8 = vld [vmem:[%s278_s0] sm:$0xff] }
   0x9   :  { %v204_v9 = vld [vmem:[%s280_s2] ss:$0 sm:$0xff] }
   0xa   :  { %114 = vmatpush.bf16.msra.mxu0 %v198_v1  ;;  %v205_v11 = vld [vmem:[%s281_s3] ss:$0 sm:$0xff] }
   0xe   :  { %115 = vmatpush.bf16.msra.mxu0 %v197_v2 }
  0x12   :  { %116 = vmatpush.bf16.msra.mxu0 %v196_v3 }
  0x16   :  { %117 = vmatpush.bf16.msra.mxu0 %v195_v4 }
  0x1a   :  { %118 = vmatpush.bf16.msra.mxu0 %v194_v5 }
  0x1e   :  { %119 = vmatpush.bf16.msra.mxu0 %v193_v6 }
  0x22   :  { %120 = vmatpush.bf16.msra.mxu0 %v192_v7 }
  0x25   :  { %121 = vmatmul.bf16.vlgmr.msra.gmra.mxu0 %v191_v8 }
  0xa2   :  { %v122_v10 = vpop.f32.mrf.mxu0 }
  0xa3   :  { %v140_v12 = vmul.f32 %v204_v9, %v122_v10 }
  0xa5   :  { %v146_v13 = vadd.f32 %v205_v11, %v140_v12 }
  0xa7   :  { %148 = vst [vmem:[%s282_s4] sm:$0xff] %v146_v13 }
  0xaa   :  { %v124_v14 = vpop.f32.mrf.mxu0 }
  0xab   :  { %v141_v15 = vmul.f32 %v204_v9, %v124_v14 }
  0xad   :  { %v147_v16 = vadd.f32 %v205_v11, %v141_v15 }
  0xaf   :  { %149 = vst [vmem:[%s282_s4 + $0x8] sm:$0xff] %v147_v16 }
  0xb0   :  { %154 = vsyncpa [#allocation3], 1 }

</bundles_post_ra>
